<compile_context>
chip_gen: v5e
topology: v5e:2x2
jax: 0.10.0
libtpu: 0.0.40
codegen_flags: <defaults>
</compile_context>

<pallas_src>
import jax
import jax.numpy as jnp
from jax import lax
from jax.experimental import pallas as pl
from jax.experimental.pallas import tpu as pltpu


M_PAD = 128  # lane width: pad output feature dim so stores are lane-dense


def _build_readout_matrix(A, B, C, D, T, m_pad=M_PAD):
    """Closed-form readout matrix W such that y_T = reshape(u,(B,T*N)) @ W.

    Recurrence (x_{-1} = 0, t = 0..T-1):
        x_t = A x_{t-1} + B u_t ,   y_T = C x_{T-1} + D u_{T-1}
      => y_T = sum_t (C A^{T-1-t} B) u_t + D u_{T-1}

    Returned W has shape (T*N, m_pad), f32, with columns >= M zero-padded so
    the kernel's output store is a full unmasked lane-width write.
    """
    P = A.shape[0]
    N = B.shape[1]
    M = C.shape[0]
    assert m_pad >= M
    blocks = []
    Ak = jnp.eye(P, dtype=jnp.float32)
    for _ in range(T):
        blocks.append(C @ Ak @ B)        # k-th entry: C A^k B  (t = T-1-k)
        Ak = A @ Ak
    blocks = blocks[::-1]                # blocks[t] = C A^{T-1-t} B
    blocks[-1] = blocks[-1] + D          # feed-through on the last timestep
    W = jnp.concatenate(blocks, axis=1)  # (M, T*N)
    W_pad = jnp.zeros((T * N, m_pad), jnp.float32).at[:, :M].set(W.T)
    return W_pad


def _ssm_readout_kernel(u_ref, w_ref, out_ref):
    """Single lane-dense matmul: action = u_flat @ W_pad.

    u_ref:   (B, T*N)   flattened disturbance window (batch-first)
    w_ref:   (T*N, 128) precomputed impulse-response matrix (zero-padded)
    out_ref: (B, 128)   padded action; wrapper slices the first M columns
    """
    out_ref[...] = jnp.dot(u_ref[...], w_ref[...],
                           preferred_element_type=jnp.float32)


def ssm_last_step(u_btn, w_pad, num_actions):
    """u_btn: (B, T, N) batch-first disturbance window. Returns (B, M)."""
    Bt, T, N = u_btn.shape
    assert T >= 1, "disturbance time window must have at least one timestep"
    assert w_pad.shape[0] == T * N
    u_flat = jnp.reshape(u_btn.astype(jnp.float32), (Bt, T * N))  # free view
    vmem = pl.BlockSpec(memory_space=pltpu.MemorySpace.VMEM)
    out_pad = pl.pallas_call(
        _ssm_readout_kernel,
        out_shape=jax.ShapeDtypeStruct((Bt, w_pad.shape[1]), jnp.float32),
        in_specs=[vmem, vmem],
        out_specs=vmem,
    )(u_flat, w_pad)
    return out_pad[:, :num_actions]


class ActorPallas:
    """Pallas port of Actor: deterministic synthetic SSM parameters."""

    def __init__(self, num_states, num_actions, control_action_upper_bound,
                 num_dynamics_states=2, hidden_dim=16, param_key=None):
        self.control_action_upper_bound = control_action_upper_bound
        self.num_states = num_states
        self.num_actions = num_actions
        self.num_dynamics_states = num_dynamics_states
        if param_key is None:
            param_key = jax.random.PRNGKey(42)
        ka, kb, kc, kd = jax.random.split(param_key, 4)
        P, N, M = num_dynamics_states, num_states, num_actions
        # Stable-ish transition matrix for a well-behaved model.
        self.A = 0.9 * jnp.eye(P, dtype=jnp.float32) + \
            0.05 * jax.random.normal(ka, (P, P), jnp.float32)
        self.B = 0.1 * jax.random.normal(kb, (P, N), jnp.float32)
        self.C = 0.1 * jax.random.normal(kc, (M, P), jnp.float32)
        self.D = 0.1 * jax.random.normal(kd, (M, N), jnp.float32)
        self.m_term = None
        self._w_cache = {}  # readout matrix cached per window length T

    def _readout(self, T):
        if T not in self._w_cache:
            self._w_cache[T] = _build_readout_matrix(
                self.A, self.B, self.C, self.D, T)
        return self._w_cache[T]

    def __call__(self, state, dynamics_input_time_window,
                 dynamics_disturbance_time_window):
        d = dynamics_disturbance_time_window
        if d.ndim == 2:
            # (T, N): add batch dim, run SSM readout, take last step, squeeze.
            assert d.shape[1] == self.num_states, \
                "2-D disturbance window must be (T, num_states)"
            w = self._readout(d.shape[0])
            out = ssm_last_step(d[None, ...], w, self.num_actions)  # (1, M)
            self.m_term = out[0]
            return jnp.squeeze(out, axis=0)
        elif d.ndim == 3:
            assert d.shape[2] == self.num_states, \
                "3-D disturbance window must be (B, T, num_states)"
            w = self._readout(d.shape[1])
            out = ssm_last_step(d, w, self.num_actions)  # (B, M)
            self.m_term = out
            # matches torch .squeeze(0): no-op for batch > 1
            return jnp.squeeze(out, axis=0) if out.shape[0] == 1 else out
        else:
            raise ValueError(
                "dynamics_disturbance_time_window must be 2-D or 3-D")


def _ssm_last_step_ref(u_btn, A, B, C, D):
    """Pure-JAX sequential-recurrence reference for correctness checking."""
    def scan_one(u_tn):  # (T, N)
        def step(x, u_t):
            x_new = A @ x + B @ u_t
            return x_new, None
        x0 = jnp.zeros((A.shape[0],), jnp.float32)
        xT, _ = lax.scan(step, x0, u_tn)
        return C @ xT + D @ u_tn[-1]
    return jax.vmap(scan_one)(u_btn)


if __name__ == "__main__":
    num_states = 4
    num_actions = 2
    num_dynamics_states = 2
    batch = 2
    seq = 8

    key = jax.random.PRNGKey(0)
    k_state, k_win, k_dist = jax.random.split(key, 3)
    state = jax.random.normal(k_state, (batch, num_states), jnp.float32)
    dynamics_input_time_window = jax.random.normal(
        k_win, (batch, seq, num_states), jnp.float32)   # unused by forward
    dynamics_disturbance_time_window = jax.random.normal(
        k_dist, (batch, seq, num_states), jnp.float32)

    actor = ActorPallas(num_states, num_actions,
                        control_action_upper_bound=1.0,
                        num_dynamics_states=num_dynamics_states)

    action = actor(state, dynamics_input_time_window,
                   dynamics_disturbance_time_window)
    action = jax.block_until_ready(action)

    ref = _ssm_last_step_ref(dynamics_disturbance_time_window,
                             actor.A, actor.B, actor.C, actor.D)
    assert action.shape == (batch, num_actions)
    assert jnp.allclose(action, ref, atol=1e-4, rtol=1e-4), \
        f"max abs err {jnp.max(jnp.abs(action - ref))}"

    # Also exercise the 2-D (single trajectory) path.
    action_1d = actor(state[0], dynamics_input_time_window[0],
                      dynamics_disturbance_time_window[0])
    action_1d = jax.block_until_ready(action_1d)
    assert action_1d.shape == (num_actions,)
    assert jnp.allclose(action_1d, ref[0], atol=1e-4, rtol=1e-4)

    print("KERNEL_OK")
</pallas_src>

<mosaic_0001>
module attributes {stable_mosaic.version = 11 : i64} {
  func.func @_ssm_readout_kernel(%arg0: memref<2x32xf32, #tpu.memory_space<vmem>>, %arg1: memref<32x128xf32, #tpu.memory_space<vmem>>, %arg2: memref<2x128xf32, #tpu.memory_space<vmem>>) attributes {dimension_semantics = [], scalar_prefetch = 0 : i64, scratch_operands = 0 : i64, tpu.core_type = #tpu.core_type<tc>} {
    %c0 = arith.constant 0 : index
    %c0_0 = arith.constant 0 : index
    %0 = vector.load %arg0[%c0, %c0_0] : memref<2x32xf32, #tpu.memory_space<vmem>>, vector<2x32xf32>
    %c0_1 = arith.constant 0 : index
    %c0_2 = arith.constant 0 : index
    %1 = vector.load %arg1[%c0_1, %c0_2] : memref<32x128xf32, #tpu.memory_space<vmem>>, vector<32x128xf32>
    %cst = arith.constant dense<0.000000e+00> : vector<2x128xf32>
    %2 = tpu.matmul %0, %1, %cst {dimension_numbers = #tpu.dot_dimension_numbers<[1], [0], [0], [1], [0, 0, 1, 1], [], []>} : vector<2x32xf32>, vector<32x128xf32>, vector<2x128xf32> -> vector<2x128xf32>
    %c0_3 = arith.constant 0 : index
    %c0_4 = arith.constant 0 : index
    %3 = vector.load %arg2[%c0_3, %c0_4] : memref<2x128xf32, #tpu.memory_space<vmem>>, vector<2x128xf32>
    tpu.vector_store %arg2[%c0_3, %c0_4], %2 {strides = array<i32>} : memref<2x128xf32, #tpu.memory_space<vmem>>, vector<2x128xf32>,
    return
  }
}

</mosaic_0001>

<bundles_post_ra>
// kernel: tpu_custom_call.1
= control target key start
LH: loop header
LB: loop body
LE: loop exit
PB: predicated region body
PF: predicated region fallthrough
CT: control target
= control target key end

     0   :  { %7 = vsyncpa [#allocation3], 0  ;;  %s203_s0 = inlined_call_operand.hbm [shape: f32[2,32], index: 0, kind: input, shape index: {}]   ;;  %s204_s1 = inlined_call_operand.hbm [shape: f32[32,128], index: 1, kind: input, shape index: {}]   ;;  %s205_s2 = inlined_call_operand.hbm [shape: f32[2,128], index: 2, kind: output, shape index: {}]  }
   0x1   :  { %8 = vsyncpa [#allocation6], 0 }
   0x2   :  { %9 = vsyncpa [#allocation4], 0  ;;  %s15_s11 = sshll.u32 %s203_s0, 4  ;;  %s174_s12 = smov [#allocation2]   ;;  %s16_s11 = int_to_ptr.hbm [resolvable:$true] %s15_s11 }
   0x3   :  { %s17_s13 = sshll.u32 %s174_s12, 4  ;;  %s25_s16 = sshll.u32 %s204_s1, 4  ;;  %s18_s13 = int_to_ptr.vmem [resolvable:$true] %s17_s13  ;;  %s26_s16 = int_to_ptr.hbm [resolvable:$true] %s25_s16 }
   0x4   :  { %20 = dma.hbm_to_vmem [thread:$0]  %s16_s11, 32, %s18_s13, [#allocation3]  }
   0x5   :  { %s175_s17 = smov [#allocation5]   ;;  %s176_s19 = smov 128  }
   0x6   :  { %s27_s18 = sshll.u32 %s175_s17, 4  ;;  %s177_s20 = smov 8   ;;  %s28_s18 = int_to_ptr.vmem [resolvable:$true] %s27_s18 }
   0x7   :  { %33 = dma.hbm_to_vmem [thread:$0]  %s26_s16, 512, %s28_s18, [#allocation6], %s176_s19, %s176_s19, %s177_s20  }
   0x8   :  { %168 = dma.done.wait [#allocation3], 32  }
   0x9   :  { %169 = vsyncadd [#allocation3], 4294967264 }
   0xa   :  { %170 = dma.done.wait [#allocation6], 512  }
   0xb   :  { %171 = vsyncadd [#allocation6], 4294966784  ;;  %v46_v0 = vld [vmem:[#allocation5 + $0x18] sm:$0xff]  ;;  %v45_v1 = vld [vmem:[#allocation5 + $0x10] sm:$0xff]  ;;  %vm47_vm0 = vcmask 261120   ;;  %s178_s0 = smov [#allocation7]  }
   0xc   :  { %63 = vmatpush.msra.mxu0 %v46_v0  ;;  %v44_v2 = vld [vmem:[#allocation5 + $0x8] sm:$0xff]  ;;  %v43_v3 = vld [vmem:[#allocation5] sm:$0xff]  ;;  %v42_v4 = vld [vmem:[#allocation2] sm:$0x3]  ;;  %s77_s1 = sshll.u32 %s178_s0, 4  ;;  %s79_s23 = sshll.u32 %s205_s2, 4  ;;  %s78_s1 = int_to_ptr.vmem [resolvable:$true] %s77_s1  ;;  %s80_s23 = int_to_ptr.hbm [resolvable:$true] %s79_s23 }
   0xe   :  { %64 = vmatpush.msra.mxu0 %v45_v1 }
  0x10   :  { %65 = vmatpush.msra.mxu0 %v44_v2 }
  0x12   :  { %66 = vmatpush.msra.mxu0 %v43_v3 }
  0x13   :  { %90 = vmatmul.msk.f32.vlgmr.msra.gmra.mxu0 %vm47_vm0, %v42_v4 }
  0x90   :  { %v68_v5 = vpop.f32.mrf.mxu0 }
  0x91   :  { %71 = vst [vmem:[#allocation7] sm:$0x3] %v68_v5 }
  0x92   :  { %82 = dma.vmem_to_hbm [thread:$0]  %s78_s1, 32, %s80_s23, [#allocation4]  }
  0x93   :  { %172 = dma.done.wait [#allocation4], 32  }
  0x94   :  { %173 = vsyncadd [#allocation4], 4294967264 }
  0x95   :  { %87 = vsyncpa [#allocation3], 1 }
  0x96   :  { %88 = vsyncpa [#allocation6], 1 }
  0x97   :  { %89 = vsyncpa [#allocation4], 1 }

</bundles_post_ra>
